<compile_context>
chip_gen: v7x
topology: tpu7x:2x2x1
jax: 0.10.0
libtpu: 0.0.40
codegen_flags: <defaults>
</compile_context>

<pallas_src>
import jax
import jax.numpy as jnp
from jax.experimental import pallas as pl
from jax.experimental.pallas import tpu as pltpu

NEG_INF = -1e9

# ----------------------------------------------------------------------------
# Model config (small synthetic CLIP)
# ----------------------------------------------------------------------------
CFG = dict(
    hidden=32,       # transformer width (text & vision share width here)
    heads=2,         # attention heads
    layers=2,        # encoder layers per tower
    ffn=64,          # MLP intermediate size
    proj=16,         # projection_dim
    vocab=64,        # text vocab size
    max_text_pos=16,
    image_size=16,
    patch=8,
    channels=3,
)


# ----------------------------------------------------------------------------
# Fused encoder-stack kernel (one pallas_call per tower, grid = (B, L))
# ----------------------------------------------------------------------------
def _make_encoder_kernel(num_heads, causal):
    """Returns a kernel computing one full pre-LN CLIP encoder layer per grid
    step; the output block is the carried hidden state across the layer axis."""

    def layer_compute(h, pad_mask, ln1_g, ln1_b, qkv_w, qkv_b, o_w, o_b,
                      ln2_g, ln2_b, fc1_w, fc1_b, fc2_w, fc2_b):
        S, d = h.shape
        Dh = d // num_heads

        def layernorm(x, g, b):
            mu = jnp.mean(x, axis=-1, keepdims=True)
            var = jnp.mean(jnp.square(x - mu), axis=-1, keepdims=True)
            return (x - mu) * jax.lax.rsqrt(var + 1e-5) * g + b

        # --- self-attention block (LN1 fused in) ---
        x = layernorm(h, ln1_g, ln1_b)
        qkv = jnp.dot(x.astype(jnp.bfloat16), qkv_w,
                      preferred_element_type=jnp.float32) + qkv_b   # (S, 3d)

        if causal:
            rows = jax.lax.broadcasted_iota(jnp.int32, (S, S), 0)
            cols = jax.lax.broadcasted_iota(jnp.int32, (S, S), 1)
            bias = jnp.where(rows >= cols, 0.0, NEG_INF)            # causal
            bias = bias + (1.0 - pad_mask) * NEG_INF                # + key padding
        else:
            bias = None

        def attn_head(hh):
            qh = qkv[:, hh * Dh:(hh + 1) * Dh]            # query (pre-scaled)
            kh = qkv[:, d + hh * Dh:d + (hh + 1) * Dh]
            vh = qkv[:, 2 * d + hh * Dh:2 * d + (hh + 1) * Dh]
            # contract last dims directly (no explicit k transpose)
            s = jax.lax.dot_general(
                qh.astype(jnp.bfloat16), kh.astype(jnp.bfloat16),
                (((1,), (1,)), ((), ())),
                preferred_element_type=jnp.float32)                 # (S, S)
            if bias is not None:
                s = s + bias
            m = jnp.max(s, axis=-1, keepdims=True)
            p = jnp.exp(s - m)
            p = p * pl.reciprocal(jnp.sum(p, axis=-1, keepdims=True), approx=True)
            return jnp.dot(p.astype(jnp.bfloat16), vh.astype(jnp.bfloat16),
                           preferred_element_type=jnp.float32)      # (S, Dh)

        ctx = jnp.concatenate([attn_head(hh) for hh in range(num_heads)], axis=1)
        attn_out = jnp.dot(ctx.astype(jnp.bfloat16), o_w,
                           preferred_element_type=jnp.float32) + o_b
        h = h + attn_out

        # --- MLP block (LN2 fused in), quick_gelu ---
        x = layernorm(h, ln2_g, ln2_b)
        f = jnp.dot(x.astype(jnp.bfloat16), fc1_w,
                    preferred_element_type=jnp.float32) + fc1_b
        f = f * (1.0 / (1.0 + jnp.exp(-1.702 * f)))                 # quick_gelu
        f = jnp.dot(f.astype(jnp.bfloat16), fc2_w,
                    preferred_element_type=jnp.float32) + fc2_b
        return h + f

    if causal:
        def kernel(mask_ref, h_ref, ln1_g, ln1_b, qkv_w, qkv_b, o_w, o_b,
                   ln2_g, ln2_b, fc1_w, fc1_b, fc2_w, fc2_b, out_ref):
            @pl.when(pl.program_id(1) == 0)
            def _():
                out_ref[...] = h_ref[...]
            h = out_ref[0].astype(jnp.float32)
            pad_mask = mask_ref[0]                                  # (1, S)
            out_ref[0] = layer_compute(
                h, pad_mask, ln1_g[0], ln1_b[0], qkv_w[0], qkv_b[0],
                o_w[0], o_b[0], ln2_g[0], ln2_b[0], fc1_w[0], fc1_b[0],
                fc2_w[0], fc2_b[0]).astype(out_ref.dtype)
    else:
        def kernel(h_ref, ln1_g, ln1_b, qkv_w, qkv_b, o_w, o_b,
                   ln2_g, ln2_b, fc1_w, fc1_b, fc2_w, fc2_b, out_ref):
            @pl.when(pl.program_id(1) == 0)
            def _():
                out_ref[...] = h_ref[...]
            h = out_ref[0].astype(jnp.float32)
            out_ref[0] = layer_compute(
                h, None, ln1_g[0], ln1_b[0], qkv_w[0], qkv_b[0],
                o_w[0], o_b[0], ln2_g[0], ln2_b[0], fc1_w[0], fc1_b[0],
                fc2_w[0], fc2_b[0]).astype(out_ref.dtype)

    return kernel


_ENC_PARAM_NAMES = ("ln1_g", "ln1_b", "qkv_w", "qkv_b", "o_w", "o_b",
                    "ln2_g", "ln2_b", "fc1_w", "fc1_b", "fc2_w", "fc2_b")


def run_encoder(h, enc, num_heads, attn_pad_mask=None):
    """h: (B, S, d) f32.  attn_pad_mask: (B, 1, S) f32 (1=keep) or None.
    Runs the whole encoder stack in a single pallas_call with grid (B, L)."""
    B, S, d = h.shape
    L = enc["qkv_w"].shape[0]
    causal = attn_pad_mask is not None
    kernel = _make_encoder_kernel(num_heads, causal)

    inputs, in_specs = [], []
    if causal:
        inputs.append(attn_pad_mask)
        in_specs.append(pl.BlockSpec((1, 1, S), lambda b, l: (b, 0, 0)))
    inputs.append(h)
    in_specs.append(pl.BlockSpec((1, S, d), lambda b, l: (b, 0, 0)))
    for name in _ENC_PARAM_NAMES:
        arr = enc[name]
        inputs.append(arr)
        in_specs.append(pl.BlockSpec((1,) + arr.shape[1:], lambda b, l: (l, 0, 0)))

    return pl.pallas_call(
        kernel,
        grid=(B, L),
        out_shape=jax.ShapeDtypeStruct((B, S, d), jnp.float32),
        in_specs=in_specs,
        out_specs=pl.BlockSpec((1, S, d), lambda b, l: (b, 0, 0)),
        compiler_params=pltpu.CompilerParams(
            dimension_semantics=("parallel", "arbitrary")),
    )(*inputs)


# ----------------------------------------------------------------------------
# Fused vision embedding kernel: patch matmul + CLS/pos add + pre-LN
# ----------------------------------------------------------------------------
def _vision_embed_kernel(p_ref, w_ref, cls_ref, pos_ref, g_ref, b_ref, o_ref):
    patches = p_ref[0].astype(jnp.bfloat16)                         # (nP, C*p*p)
    pe = jnp.dot(patches, w_ref[...], preferred_element_type=jnp.float32)
    h = jnp.concatenate([cls_ref[...], pe], axis=0) + pos_ref[...]  # (S, d)
    mu = jnp.mean(h, axis=-1, keepdims=True)
    var = jnp.mean(jnp.square(h - mu), axis=-1, keepdims=True)
    o_ref[0] = ((h - mu) * jax.lax.rsqrt(var + 1e-5)
                * g_ref[...] + b_ref[...]).astype(o_ref.dtype)


def pallas_vision_embed(patches, vp):
    B, nP, Cpp = patches.shape
    S, d = vp["pos_emb"].shape
    return pl.pallas_call(
        _vision_embed_kernel,
        grid=(B,),
        out_shape=jax.ShapeDtypeStruct((B, S, d), jnp.float32),
        in_specs=[
            pl.BlockSpec((1, nP, Cpp), lambda b: (b, 0, 0)),
            pl.BlockSpec((Cpp, d), lambda b: (0, 0)),
            pl.BlockSpec((1, d), lambda b: (0, 0)),
            pl.BlockSpec((S, d), lambda b: (0, 0)),
            pl.BlockSpec((1, d), lambda b: (0, 0)),
            pl.BlockSpec((1, d), lambda b: (0, 0)),
        ],
        out_specs=pl.BlockSpec((1, S, d), lambda b: (b, 0, 0)),
        compiler_params=pltpu.CompilerParams(dimension_semantics=("parallel",)),
    )(patches, vp["patch_w"], vp["class_emb"], vp["pos_emb"],
      vp["ln_pre_g"], vp["ln_pre_b"])


# ----------------------------------------------------------------------------
# Fused head kernel: final LayerNorm + projection (no bias)
# ----------------------------------------------------------------------------
def _head_kernel(x_ref, g_ref, b_ref, w_ref, o_ref):
    x = x_ref[...].astype(jnp.float32)
    mu = jnp.mean(x, axis=-1, keepdims=True)
    var = jnp.mean(jnp.square(x - mu), axis=-1, keepdims=True)
    y = (x - mu) * jax.lax.rsqrt(var + 1e-5) * g_ref[...] + b_ref[...]
    o_ref[...] = jnp.dot(y.astype(jnp.bfloat16), w_ref[...],
                         preferred_element_type=jnp.float32).astype(o_ref.dtype)


def pallas_head(pooled, g, b, w):
    B, d = pooled.shape
    P = w.shape[1]
    return pl.pallas_call(
        _head_kernel,
        out_shape=jax.ShapeDtypeStruct((B, P), jnp.float32),
    )(pooled, g, b, w)


# ----------------------------------------------------------------------------
# get_text_features / get_image_features
# ----------------------------------------------------------------------------
def get_text_features(params, input_ids, attention_mask=None):
    cfg = params["cfg"]
    tp = params["text"]
    B, S = input_ids.shape

    # token + positional embeddings (tiny gather: kept in XLA glue)
    h = jnp.take(tp["tok_emb"], input_ids, axis=0) + tp["pos_emb"][:S][None]

    if attention_mask is None:
        attention_mask = jnp.ones((B, S), jnp.float32)
    pad = attention_mask.astype(jnp.float32).reshape(B, 1, S)   # 1 = keep

    h = run_encoder(h, tp["enc"], cfg["heads"], attn_pad_mask=pad)

    # CLIP pools the hidden state at argmax(input_ids) (EOS has highest id).
    eos_idx = jnp.argmax(input_ids, axis=-1)
    pooled = h[jnp.arange(B), eos_idx]                          # (B, d)
    return pallas_head(pooled, tp["lnf_g"], tp["lnf_b"], tp["text_proj_w"])


def get_image_features(params, pixel_values):
    cfg = params["cfg"]
    vp = params["vision"]
    p = cfg["patch"]
    B, C, Hi, Wi = pixel_values.shape
    nH, nW = Hi // p, Wi // p

    # Conv2d(kernel=stride=patch, bias=False) == patchify + matmul.
    patches = pixel_values.reshape(B, C, nH, p, nW, p).transpose(0, 2, 4, 1, 3, 5)
    patches = patches.reshape(B, nH * nW, C * p * p).astype(jnp.float32)

    h = pallas_vision_embed(patches, vp)                        # embed + pre-LN
    h = run_encoder(h, vp["enc"], cfg["heads"], attn_pad_mask=None)

    pooled = h[:, 0]                                            # CLS token
    return pallas_head(pooled, vp["ln_post_g"], vp["ln_post_b"],
                       vp["visual_proj_w"])


def clip_forward(params, x):
    """Mirrors CLIP.forward: dict -> text features, otherwise image features."""
    if isinstance(x, dict):
        return get_text_features(params, **x)
    else:
        return get_image_features(params, x)


# ----------------------------------------------------------------------------
# Deterministic synthetic parameter init (pre-shaped / pre-cast for the kernels)
# ----------------------------------------------------------------------------
def init_params(key):
    cfg = CFG
    d, ffn, proj, L, H = cfg["hidden"], cfg["ffn"], cfg["proj"], cfg["layers"], cfg["heads"]
    Dh = d // H
    scale = Dh ** -0.5
    keys = iter(jax.random.split(key, 128))

    def rnd(shape, std=0.02):
        return (std * jax.random.normal(next(keys), shape)).astype(jnp.float32)

    def encoder_params():
        qkv_w, o_w, fc1_w, fc2_w = [], [], [], []
        for _ in range(L):
            q = rnd((d, d)) * scale          # fold query scale into fused weight
            k = rnd((d, d))
            v = rnd((d, d))
            qkv_w.append(jnp.concatenate([q, k, v], axis=1))
            o_w.append(rnd((d, d)))
            fc1_w.append(rnd((d, ffn)))
            fc2_w.append(rnd((ffn, d)))
        return {
            "ln1_g": jnp.ones((L, 1, d), jnp.float32),
            "ln1_b": jnp.zeros((L, 1, d), jnp.float32),
            "qkv_w": jnp.stack(qkv_w).astype(jnp.bfloat16),
            "qkv_b": jnp.zeros((L, 1, 3 * d), jnp.float32),   # q-bias would also be scaled
            "o_w": jnp.stack(o_w).astype(jnp.bfloat16),
            "o_b": jnp.zeros((L, 1, d), jnp.float32),
            "ln2_g": jnp.ones((L, 1, d), jnp.float32),
            "ln2_b": jnp.zeros((L, 1, d), jnp.float32),
            "fc1_w": jnp.stack(fc1_w).astype(jnp.bfloat16),
            "fc1_b": jnp.zeros((L, 1, ffn), jnp.float32),
            "fc2_w": jnp.stack(fc2_w).astype(jnp.bfloat16),
            "fc2_b": jnp.zeros((L, 1, d), jnp.float32),
        }

    text = {
        "tok_emb": rnd((cfg["vocab"], d)),
        "pos_emb": rnd((cfg["max_text_pos"], d)),
        "enc": encoder_params(),
        "lnf_g": jnp.ones((1, d), jnp.float32),
        "lnf_b": jnp.zeros((1, d), jnp.float32),
        "text_proj_w": rnd((d, proj)).astype(jnp.bfloat16),
    }

    num_patches = (cfg["image_size"] // cfg["patch"]) ** 2
    vision = {
        "patch_w": rnd((cfg["channels"] * cfg["patch"] * cfg["patch"], d)).astype(jnp.bfloat16),
        "class_emb": rnd((1, d)),
        "pos_emb": rnd((num_patches + 1, d)),
        "ln_pre_g": jnp.ones((1, d), jnp.float32),
        "ln_pre_b": jnp.zeros((1, d), jnp.float32),
        "enc": encoder_params(),
        "ln_post_g": jnp.ones((1, d), jnp.float32),
        "ln_post_b": jnp.zeros((1, d), jnp.float32),
        "visual_proj_w": rnd((d, proj)).astype(jnp.bfloat16),
    }

    # TODO(synk): tokenizer / image-processor preprocessing and pretrained
    # checkpoint loading have no Pallas equivalent; weights are synthetic.
    return {"cfg": cfg, "text": text, "vision": vision}


# ----------------------------------------------------------------------------
if __name__ == "__main__":
    key = jax.random.PRNGKey(0)
    pkey, tkey, ikey = jax.random.split(key, 3)
    params = init_params(pkey)

    B, S = 2, 8
    input_ids = jax.random.randint(tkey, (B, S), 0, CFG["vocab"], dtype=jnp.int32)
    attention_mask = jnp.ones((B, S), jnp.int32)
    text_inputs = {"input_ids": input_ids, "attention_mask": attention_mask}

    pixel_values = jax.random.normal(
        ikey, (B, CFG["channels"], CFG["image_size"], CFG["image_size"]), jnp.float32
    )

    text_feats = clip_forward(params, text_inputs)    # dict  -> text path
    image_feats = clip_forward(params, pixel_values)  # array -> image path
    jax.block_until_ready((text_feats, image_feats))

    assert text_feats.shape == (B, CFG["proj"])
    assert image_feats.shape == (B, CFG["proj"])
    assert bool(jnp.all(jnp.isfinite(text_feats))) and bool(jnp.all(jnp.isfinite(image_feats)))
    print("KERNEL_OK")
</pallas_src>

<mosaic_0001>
module attributes {stable_mosaic.version = 11 : i64} {
  func.func @kernel(%arg0: i32, %arg1: i32, %arg2: memref<1x1x8xf32, #tpu.memory_space<vmem>>, %arg3: memref<1x8x32xf32, #tpu.memory_space<vmem>>, %arg4: memref<1x1x32xf32, #tpu.memory_space<vmem>>, %arg5: memref<1x1x32xf32, #tpu.memory_space<vmem>>, %arg6: memref<1x32x96xbf16, #tpu.memory_space<vmem>>, %arg7: memref<1x1x96xf32, #tpu.memory_space<vmem>>, %arg8: memref<1x32x32xbf16, #tpu.memory_space<vmem>>, %arg9: memref<1x1x32xf32, #tpu.memory_space<vmem>>, %arg10: memref<1x1x32xf32, #tpu.memory_space<vmem>>, %arg11: memref<1x1x32xf32, #tpu.memory_space<vmem>>, %arg12: memref<1x32x64xbf16, #tpu.memory_space<vmem>>, %arg13: memref<1x1x64xf32, #tpu.memory_space<vmem>>, %arg14: memref<1x64x32xbf16, #tpu.memory_space<vmem>>, %arg15: memref<1x1x32xf32, #tpu.memory_space<vmem>>, %arg16: memref<1x8x32xf32, #tpu.memory_space<vmem>>) attributes {dimension_semantics = [#tpu.dimension_semantics<parallel>, #tpu.dimension_semantics<arbitrary>], iteration_bounds = array<i64: 2, 2>, scalar_prefetch = 0 : i64, scratch_operands = 0 : i64, tpu.core_type = #tpu.core_type<tc>, window_params = [{transform_indices = @transform_0, window_bounds = array<i64: 1, 1, 8>}, {transform_indices = @transform_1, window_bounds = array<i64: 1, 8, 32>}, {transform_indices = @transform_2, window_bounds = array<i64: 1, 1, 32>}, {transform_indices = @transform_3, window_bounds = array<i64: 1, 1, 32>}, {transform_indices = @transform_4, window_bounds = array<i64: 1, 32, 96>}, {transform_indices = @transform_5, window_bounds = array<i64: 1, 1, 96>}, {transform_indices = @transform_6, window_bounds = array<i64: 1, 32, 32>}, {transform_indices = @transform_7, window_bounds = array<i64: 1, 1, 32>}, {transform_indices = @transform_8, window_bounds = array<i64: 1, 1, 32>}, {transform_indices = @transform_9, window_bounds = array<i64: 1, 1, 32>}, {transform_indices = @transform_10, window_bounds = array<i64: 1, 32, 64>}, {transform_indices = @transform_11, window_bounds = array<i64: 1, 1, 64>}, {transform_indices = @transform_12, window_bounds = array<i64: 1, 64, 32>}, {transform_indices = @transform_13, window_bounds = array<i64: 1, 1, 32>}, {transform_indices = @transform_14, window_bounds = array<i64: 1, 8, 32>}]} {
    %c0_i32 = arith.constant 0 : i32
    %0 = arith.cmpi eq, %arg1, %c0_i32 : i32
    %1 = arith.extui %0 : i1 to i32
    %c0_i32_0 = arith.constant 0 : i32
    %2 = arith.cmpi ne, %1, %c0_i32_0 : i32
    scf.if %2 {
      %c0_73 = arith.constant 0 : index
      %c0_74 = arith.constant 0 : index
      %c0_75 = arith.constant 0 : index
      %157 = vector.load %arg3[%c0_73, %c0_74, %c0_75] : memref<1x8x32xf32, #tpu.memory_space<vmem>>, vector<1x8x32xf32>
      %c0_76 = arith.constant 0 : index
      %c0_77 = arith.constant 0 : index
      %c0_78 = arith.constant 0 : index
      %158 = vector.load %arg16[%c0_76, %c0_77, %c0_78] : memref<1x8x32xf32, #tpu.memory_space<vmem>>, vector<1x8x32xf32>
      tpu.vector_store %arg16[%c0_76, %c0_77, %c0_78], %157 {strides = array<i32>} : memref<1x8x32xf32, #tpu.memory_space<vmem>>, vector<1x8x32xf32>,
    } else {
    }
    %c0 = arith.constant 0 : index
    %c0_1 = arith.constant 0 : index
    %c0_2 = arith.constant 0 : index
    %3 = vector.load %arg16[%c0, %c0_1, %c0_2] : memref<1x8x32xf32, #tpu.memory_space<vmem>>, vector<1x8x32xf32>
    %4 = vector.shape_cast %3 : vector<1x8x32xf32> to vector<8x32xf32>
    %c0_3 = arith.constant 0 : index
    %c0_4 = arith.constant 0 : index
    %c0_5 = arith.constant 0 : index
    %5 = vector.load %arg2[%c0_3, %c0_4, %c0_5] : memref<1x1x8xf32, #tpu.memory_space<vmem>>, vector<1x1x8xf32>
    %6 = vector.shape_cast %5 : vector<1x1x8xf32> to vector<1x8xf32>
    %c0_6 = arith.constant 0 : index
    %c0_7 = arith.constant 0 : index
    %c0_8 = arith.constant 0 : index
    %7 = vector.load %arg4[%c0_6, %c0_7, %c0_8] : memref<1x1x32xf32, #tpu.memory_space<vmem>>, vector<1x1x32xf32>
    %8 = vector.shape_cast %7 : vector<1x1x32xf32> to vector<1x32xf32>
    %c0_9 = arith.constant 0 : index
    %c0_10 = arith.constant 0 : index
    %c0_11 = arith.constant 0 : index
    %9 = vector.load %arg5[%c0_9, %c0_10, %c0_11] : memref<1x1x32xf32, #tpu.memory_space<vmem>>, vector<1x1x32xf32>
    %10 = vector.shape_cast %9 : vector<1x1x32xf32> to vector<1x32xf32>
    %c0_12 = arith.constant 0 : index
    %c0_13 = arith.constant 0 : index
    %c0_14 = arith.constant 0 : index
    %11 = vector.load %arg6[%c0_12, %c0_13, %c0_14] : memref<1x32x96xbf16, #tpu.memory_space<vmem>>, vector<1x32x96xbf16>
    %12 = vector.shape_cast %11 : vector<1x32x96xbf16> to vector<32x96xbf16>
    %c0_15 = arith.constant 0 : index
    %c0_16 = arith.constant 0 : index
    %c0_17 = arith.constant 0 : index
    %13 = vector.load %arg7[%c0_15, %c0_16, %c0_17] : memref<1x1x96xf32, #tpu.memory_space<vmem>>, vector<1x1x96xf32>
    %14 = vector.shape_cast %13 : vector<1x1x96xf32> to vector<1x96xf32>
    %c0_18 = arith.constant 0 : index
    %c0_19 = arith.constant 0 : index
    %c0_20 = arith.constant 0 : index
    %15 = vector.load %arg8[%c0_18, %c0_19, %c0_20] : memref<1x32x32xbf16, #tpu.memory_space<vmem>>, vector<1x32x32xbf16>
    %16 = vector.shape_cast %15 : vector<1x32x32xbf16> to vector<32x32xbf16>
    %c0_21 = arith.constant 0 : index
    %c0_22 = arith.constant 0 : index
    %c0_23 = arith.constant 0 : index
    %17 = vector.load %arg9[%c0_21, %c0_22, %c0_23] : memref<1x1x32xf32, #tpu.memory_space<vmem>>, vector<1x1x32xf32>
    %18 = vector.shape_cast %17 : vector<1x1x32xf32> to vector<1x32xf32>
    %c0_24 = arith.constant 0 : index
    %c0_25 = arith.constant 0 : index
    %c0_26 = arith.constant 0 : index
    %19 = vector.load %arg10[%c0_24, %c0_25, %c0_26] : memref<1x1x32xf32, #tpu.memory_space<vmem>>, vector<1x1x32xf32>
    %20 = vector.shape_cast %19 : vector<1x1x32xf32> to vector<1x32xf32>
    %c0_27 = arith.constant 0 : index
    %c0_28 = arith.constant 0 : index
    %c0_29 = arith.constant 0 : index
    %21 = vector.load %arg11[%c0_27, %c0_28, %c0_29] : memref<1x1x32xf32, #tpu.memory_space<vmem>>, vector<1x1x32xf32>
    %22 = vector.shape_cast %21 : vector<1x1x32xf32> to vector<1x32xf32>
    %c0_30 = arith.constant 0 : index
    %c0_31 = arith.constant 0 : index
    %c0_32 = arith.constant 0 : index
    %23 = vector.load %arg12[%c0_30, %c0_31, %c0_32] : memref<1x32x64xbf16, #tpu.memory_space<vmem>>, vector<1x32x64xbf16>
    %24 = vector.shape_cast %23 : vector<1x32x64xbf16> to vector<32x64xbf16>
    %c0_33 = arith.constant 0 : index
    %c0_34 = arith.constant 0 : index
    %c0_35 = arith.constant 0 : index
    %25 = vector.load %arg13[%c0_33, %c0_34, %c0_35] : memref<1x1x64xf32, #tpu.memory_space<vmem>>, vector<1x1x64xf32>
    %26 = vector.shape_cast %25 : vector<1x1x64xf32> to vector<1x64xf32>
    %c0_36 = arith.constant 0 : index
    %c0_37 = arith.constant 0 : index
    %c0_38 = arith.constant 0 : index
    %27 = vector.load %arg14[%c0_36, %c0_37, %c0_38] : memref<1x64x32xbf16, #tpu.memory_space<vmem>>, vector<1x64x32xbf16>
    %28 = vector.shape_cast %27 : vector<1x64x32xbf16> to vector<64x32xbf16>
    %c0_39 = arith.constant 0 : index
    %c0_40 = arith.constant 0 : index
    %c0_41 = arith.constant 0 : index
    %29 = vector.load %arg15[%c0_39, %c0_40, %c0_41] : memref<1x1x32xf32, #tpu.memory_space<vmem>>, vector<1x1x32xf32>
    %30 = vector.shape_cast %29 : vector<1x1x32xf32> to vector<1x32xf32>
    %cst = arith.constant dense<0.000000e+00> : vector<8xf32>
    %31 = vector.multi_reduction <add>, %4, %cst [1] : vector<8x32xf32> to vector<8xf32>
    %32 = vector.shape_cast %31 : vector<8xf32> to vector<8x1xf32>
    %cst_42 = arith.constant 3.200000e+01 : f32
    %33 = vector.broadcast %cst_42 : f32 to vector<8x1xf32>
    %34 = arith.divf %32, %33 : vector<8x1xf32>
    %35 = vector.broadcast %34 : vector<8x1xf32> to vector<8x32xf32>
    %36 = arith.subf %4, %35 : vector<8x32xf32>
    %37 = arith.mulf %36, %36 : vector<8x32xf32>
    %cst_43 = arith.constant dense<0.000000e+00> : vector<8xf32>
    %38 = vector.multi_reduction <add>, %37, %cst_43 [1] : vector<8x32xf32> to vector<8xf32>
    %39 = vector.shape_cast %38 : vector<8xf32> to vector<8x1xf32>
    %cst_44 = arith.constant 3.200000e+01 : f32
    %40 = vector.broadcast %cst_44 : f32 to vector<8x1xf32>
    %41 = arith.divf %39, %40 : vector<8x1xf32>
    %42 = vector.broadcast %34 : vector<8x1xf32> to vector<8x32xf32>
    %43 = arith.subf %4, %42 : vector<8x32xf32>
    %cst_45 = arith.constant 9.99999974E-6 : f32
    %44 = vector.broadcast %cst_45 : f32 to vector<8x1xf32>
    %45 = arith.addf %41, %44 : vector<8x1xf32>
    %46 = math.rsqrt %45 : vector<8x1xf32>
    %47 = vector.broadcast %46 : vector<8x1xf32> to vector<8x32xf32>
    %48 = arith.mulf %43, %47 : vector<8x32xf32>
    %49 = vector.broadcast %8 : vector<1x32xf32> to vector<8x32xf32>
    %50 = arith.mulf %48, %49 : vector<8x32xf32>
    %51 = vector.broadcast %10 : vector<1x32xf32> to vector<8x32xf32>
    %52 = arith.addf %50, %51 : vector<8x32xf32>
    %53 = arith.truncf %52 : vector<8x32xf32> to vector<8x32xbf16>
    %cst_46 = arith.constant dense<0.000000e+00> : vector<8x96xf32>
    %54 = tpu.matmul %53, %12, %cst_46 {dimension_numbers = #tpu.dot_dimension_numbers<[1], [0], [0], [1], [0, 0, 1, 1], [], []>} : vector<8x32xbf16>, vector<32x96xbf16>, vector<8x96xf32> -> vector<8x96xf32>
    %55 = vector.broadcast %14 : vector<1x96xf32> to vector<8x96xf32>
    %56 = arith.addf %54, %55 : vector<8x96xf32>
    %57 = tpu.iota {dimensions = array<i32: 0>} : vector<8x8xi32>
    %58 = tpu.iota {dimensions = array<i32: 1>} : vector<8x8xi32>
    %59 = arith.cmpi sge, %57, %58 : vector<8x8xi32>
    %cst_47 = arith.constant 0.000000e+00 : f32
    %cst_48 = arith.constant -1.000000e+09 : f32
    %60 = vector.broadcast %cst_47 : f32 to vector<8x8xf32>
    %61 = vector.broadcast %cst_48 : f32 to vector<8x8xf32>
    %62 = arith.select %59, %60, %61 : vector<8x8xi1>, vector<8x8xf32>
    %cst_49 = arith.constant 1.000000e+00 : f32
    %63 = vector.broadcast %cst_49 : f32 to vector<1x8xf32>
    %64 = arith.subf %63, %6 : vector<1x8xf32>
    %cst_50 = arith.constant -1.000000e+09 : f32
    %65 = vector.broadcast %cst_50 : f32 to vector<1x8xf32>
    %66 = arith.mulf %64, %65 : vector<1x8xf32>
    %67 = vector.broadcast %66 : vector<1x8xf32> to vector<8x8xf32>
    %68 = arith.addf %62, %67 : vector<8x8xf32>
    %69 = vector.extract_strided_slice %56 {offsets = [0, 0], sizes = [8, 16], strides = [1, 1]} : vector<8x96xf32> to vector<8x16xf32>
    %70 = vector.extract_strided_slice %56 {offsets = [0, 32], sizes = [8, 16], strides = [1, 1]} : vector<8x96xf32> to vector<8x16xf32>
    %71 = vector.extract_strided_slice %56 {offsets = [0, 64], sizes = [8, 16], strides = [1, 1]} : vector<8x96xf32> to vector<8x16xf32>
    %72 = arith.truncf %69 : vector<8x16xf32> to vector<8x16xbf16>
    %73 = arith.truncf %70 : vector<8x16xf32> to vector<8x16xbf16>
    %cst_51 = arith.constant dense<0.000000e+00> : vector<8x8xf32>
    %74 = tpu.matmul %72, %73, %cst_51 {dimension_numbers = #tpu.dot_dimension_numbers<[1], [1], [0], [0], [0, 0, 1, 0], [], []>} : vector<8x16xbf16>, vector<8x16xbf16>, vector<8x8xf32> -> vector<8x8xf32>
    %75 = arith.addf %74, %68 : vector<8x8xf32>
    %cst_52 = arith.constant dense<0xFF800000> : vector<8xf32>
    %76 = vector.multi_reduction <maximumf>, %75, %cst_52 [1] : vector<8x8xf32> to vector<8xf32>
    %77 = vector.shape_cast %76 : vector<8xf32> to vector<8x1xf32>
    %78 = vector.broadcast %77 : vector<8x1xf32> to vector<8x8xf32>
    %79 = arith.subf %75, %78 : vector<8x8xf32>
    %80 = math.exp %79 : vector<8x8xf32>
    %cst_53 = arith.constant dense<0.000000e+00> : vector<8xf32>
    %81 = vector.multi_reduction <add>, %80, %cst_53 [1] : vector<8x8xf32> to vector<8xf32>
    %82 = vector.shape_cast %81 : vector<8xf32> to vector<8x1xf32>
    %83 = tpu.reciprocal %82 {approx = true} : vector<8x1xf32> -> vector<8x1xf32>
    %84 = vector.broadcast %83 : vector<8x1xf32> to vector<8x8xf32>
    %85 = arith.mulf %80, %84 : vector<8x8xf32>
    %86 = arith.truncf %85 : vector<8x8xf32> to vector<8x8xbf16>
    %87 = arith.truncf %71 : vector<8x16xf32> to vector<8x16xbf16>
    %cst_54 = arith.constant dense<0.000000e+00> : vector<8x16xf32>
    %88 = tpu.matmul %86, %87, %cst_54 {dimension_numbers = #tpu.dot_dimension_numbers<[1], [0], [0], [1], [0, 0, 1, 1], [], []>} : vector<8x8xbf16>, vector<8x16xbf16>, vector<8x16xf32> -> vector<8x16xf32>
    %89 = vector.extract_strided_slice %56 {offsets = [0, 16], sizes = [8, 16], strides = [1, 1]} : vector<8x96xf32> to vector<8x16xf32>
    %90 = vector.extract_strided_slice %56 {offsets = [0, 48], sizes = [8, 16], strides = [1, 1]} : vector<8x96xf32> to vector<8x16xf32>
    %91 = vector.extract_strided_slice %56 {offsets = [0, 80], sizes = [8, 16], strides = [1, 1]} : vector<8x96xf32> to vector<8x16xf32>
    %92 = arith.truncf %89 : vector<8x16xf32> to vector<8x16xbf16>
    %93 = arith.truncf %90 : vector<8x16xf32> to vector<8x16xbf16>
    %cst_55 = arith.constant dense<0.000000e+00> : vector<8x8xf32>
    %94 = tpu.matmul %92, %93, %cst_55 {dimension_numbers = #tpu.dot_dimension_numbers<[1], [1], [0], [0], [0, 0, 1, 0], [], []>} : vector<8x16xbf16>, vector<8x16xbf16>, vector<8x8xf32> -> vector<8x8xf32>
    %95 = arith.addf %94, %68 : vector<8x8xf32>
    %cst_56 = arith.constant dense<0xFF800000> : vector<8xf32>
    %96 = vector.multi_reduction <maximumf>, %95, %cst_56 [1] : vector<8x8xf32> to vector<8xf32>
    %97 = vector.shape_cast %96 : vector<8xf32> to vector<8x1xf32>
    %98 = vector.broadcast %97 : vector<8x1xf32> to vector<8x8xf32>
    %99 = arith.subf %95, %98 : vector<8x8xf32>
    %100 = math.exp %99 : vector<8x8xf32>
    %cst_57 = arith.constant dense<0.000000e+00> : vector<8xf32>
    %101 = vector.multi_reduction <add>, %100, %cst_57 [1] : vector<8x8xf32> to vector<8xf32>
    %102 = vector.shape_cast %101 : vector<8xf32> to vector<8x1xf32>
    %103 = tpu.reciprocal %102 {approx = true} : vector<8x1xf32> -> vector<8x1xf32>
    %104 = vector.broadcast %103 : vector<8x1xf32> to vector<8x8xf32>
    %105 = arith.mulf %100, %104 : vector<8x8xf32>
    %106 = arith.truncf %105 : vector<8x8xf32> to vector<8x8xbf16>
    %107 = arith.truncf %91 : vector<8x16xf32> to vector<8x16xbf16>
    %cst_58 = arith.constant dense<0.000000e+00> : vector<8x16xf32>
    %108 = tpu.matmul %106, %107, %cst_58 {dimension_numbers = #tpu.dot_dimension_numbers<[1], [0], [0], [1], [0, 0, 1, 1], [], []>} : vector<8x8xbf16>, vector<8x16xbf16>, vector<8x16xf32> -> vector<8x16xf32>
    %109 = tpu.concatenate %88, %108 in 1 : vector<8x16xf32>, vector<8x16xf32> -> vector<8x32xf32>
    %110 = arith.truncf %109 : vector<8x32xf32> to vector<8x32xbf16>
    %cst_59 = arith.constant dense<0.000000e+00> : vector<8x32xf32>
    %111 = tpu.matmul %110, %16, %cst_59 {dimension_numbers = #tpu.dot_dimension_numbers<[1], [0], [0], [1], [0, 0, 1, 1], [], []>} : vector<8x32xbf16>, vector<32x32xbf16>, vector<8x32xf32> -> vector<8x32xf32>
    %112 = vector.broadcast %18 : vector<1x32xf32> to vector<8x32xf32>
    %113 = arith.addf %111, %112 : vector<8x32xf32>
    %114 = arith.addf %4, %113 : vector<8x32xf32>
    %cst_60 = arith.constant dense<0.000000e+00> : vector<8xf32>
    %115 = vector.multi_reduction <add>, %114, %cst_60 [1] : vector<8x32xf32> to vector<8xf32>
    %116 = vector.shape_cast %115 : vector<8xf32> to vector<8x1xf32>
    %cst_61 = arith.constant 3.200000e+01 : f32
    %117 = vector.broadcast %cst_61 : f32 to vector<8x1xf32>
    %118 = arith.divf %116, %117 : vector<8x1xf32>
    %119 = vector.broadcast %118 : vector<8x1xf32> to vector<8x32xf32>
    %120 = arith.subf %114, %119 : vector<8x32xf32>
    %121 = arith.mulf %120, %120 : vector<8x32xf32>
    %cst_62 = arith.constant dense<0.000000e+00> : vector<8xf32>
    %122 = vector.multi_reduction <add>, %121, %cst_62 [1] : vector<8x32xf32> to vector<8xf32>
    %123 = vector.shape_cast %122 : vector<8xf32> to vector<8x1xf32>
    %cst_63 = arith.constant 3.200000e+01 : f32
    %124 = vector.broadcast %cst_63 : f32 to vector<8x1xf32>
    %125 = arith.divf %123, %124 : vector<8x1xf32>
    %126 = vector.broadcast %118 : vector<8x1xf32> to vector<8x32xf32>
    %127 = arith.subf %114, %126 : vector<8x32xf32>
    %cst_64 = arith.constant 9.99999974E-6 : f32
    %128 = vector.broadcast %cst_64 : f32 to vector<8x1xf32>
    %129 = arith.addf %125, %128 : vector<8x1xf32>
    %130 = math.rsqrt %129 : vector<8x1xf32>
    %131 = vector.broadcast %130 : vector<8x1xf32> to vector<8x32xf32>
    %132 = arith.mulf %127, %131 : vector<8x32xf32>
    %133 = vector.broadcast %20 : vector<1x32xf32> to vector<8x32xf32>
    %134 = arith.mulf %132, %133 : vector<8x32xf32>
    %135 = vector.broadcast %22 : vector<1x32xf32> to vector<8x32xf32>
    %136 = arith.addf %134, %135 : vector<8x32xf32>
    %137 = arith.truncf %136 : vector<8x32xf32> to vector<8x32xbf16>
    %cst_65 = arith.constant dense<0.000000e+00> : vector<8x64xf32>
    %138 = tpu.matmul %137, %24, %cst_65 {dimension_numbers = #tpu.dot_dimension_numbers<[1], [0], [0], [1], [0, 0, 1, 1], [], []>} : vector<8x32xbf16>, vector<32x64xbf16>, vector<8x64xf32> -> vector<8x64xf32>
    %139 = vector.broadcast %26 : vector<1x64xf32> to vector<8x64xf32>
    %140 = arith.addf %138, %139 : vector<8x64xf32>
    %cst_66 = arith.constant -1.702000e+00 : f32
    %141 = vector.broadcast %cst_66 : f32 to vector<8x64xf32>
    %142 = arith.mulf %141, %140 : vector<8x64xf32>
    %143 = math.exp %142 : vector<8x64xf32>
    %cst_67 = arith.constant 1.000000e+00 : f32
    %144 = vector.broadcast %cst_67 : f32 to vector<8x64xf32>
    %145 = arith.addf %144, %143 : vector<8x64xf32>
    %cst_68 = arith.constant 1.000000e+00 : f32
    %146 = vector.broadcast %cst_68 : f32 to vector<8x64xf32>
    %147 = arith.divf %146, %145 : vector<8x64xf32>
    %148 = arith.mulf %140, %147 : vector<8x64xf32>
    %149 = arith.truncf %148 : vector<8x64xf32> to vector<8x64xbf16>
    %cst_69 = arith.constant dense<0.000000e+00> : vector<8x32xf32>
    %150 = tpu.matmul %149, %28, %cst_69 {dimension_numbers = #tpu.dot_dimension_numbers<[1], [0], [0], [1], [0, 0, 1, 1], [], []>} : vector<8x64xbf16>, vector<64x32xbf16>, vector<8x32xf32> -> vector<8x32xf32>
    %151 = vector.broadcast %30 : vector<1x32xf32> to vector<8x32xf32>
    %152 = arith.addf %150, %151 : vector<8x32xf32>
    %153 = arith.addf %114, %152 : vector<8x32xf32>
    %c0_70 = arith.constant 0 : index
    %c0_71 = arith.constant 0 : index
    %c0_72 = arith.constant 0 : index
    %154 = vector.load %arg16[%c0_70, %c0_71, %c0_72] : memref<1x8x32xf32, #tpu.memory_space<vmem>>, vector<1x8x32xf32>
    %155 = vector.shape_cast %154 : vector<1x8x32xf32> to vector<8x32xf32>
    %156 = vector.shape_cast %153 : vector<8x32xf32> to vector<1x8x32xf32>
    tpu.vector_store %arg16[%c0_70, %c0_71, %c0_72], %156 {strides = array<i32>} : memref<1x8x32xf32, #tpu.memory_space<vmem>>, vector<1x8x32xf32>,
    return
  }
  func.func @transform_0(%arg0: i32, %arg1: i32) -> (i32, i32, i32) {
    %c0_i32 = arith.constant 0 : i32
    %c0_i32_0 = arith.constant 0 : i32
    %c0_i32_1 = arith.constant 0 : i32
    return %arg0, %c0_i32, %c0_i32_0 : i32, i32, i32
  }
  func.func @transform_1(%arg0: i32, %arg1: i32) -> (i32, i32, i32) {
    %c0_i32 = arith.constant 0 : i32
    %c0_i32_0 = arith.constant 0 : i32
    %c0_i32_1 = arith.constant 0 : i32
    return %arg0, %c0_i32, %c0_i32_0 : i32, i32, i32
  }
  func.func @transform_2(%arg0: i32, %arg1: i32) -> (i32, i32, i32) {
    %c0_i32 = arith.constant 0 : i32
    %c0_i32_0 = arith.constant 0 : i32
    %c0_i32_1 = arith.constant 0 : i32
    return %arg1, %c0_i32, %c0_i32_0 : i32, i32, i32
  }
  func.func @transform_3(%arg0: i32, %arg1: i32) -> (i32, i32, i32) {
    %c0_i32 = arith.constant 0 : i32
    %c0_i32_0 = arith.constant 0 : i32
    %c0_i32_1 = arith.constant 0 : i32
    return %arg1, %c0_i32, %c0_i32_0 : i32, i32, i32
  }
  func.func @transform_4(%arg0: i32, %arg1: i32) -> (i32, i32, i32) {
    %c0_i32 = arith.constant 0 : i32
    %c0_i32_0 = arith.constant 0 : i32
    %c0_i32_1 = arith.constant 0 : i32
    return %arg1, %c0_i32, %c0_i32_0 : i32, i32, i32
  }
  func.func @transform_5(%arg0: i32, %arg1: i32) -> (i32, i32, i32) {
    %c0_i32 = arith.constant 0 : i32
    %c0_i32_0 = arith.constant 0 : i32
    %c0_i32_1 = arith.constant 0 : i32
    return %arg1, %c0_i32, %c0_i32_0 : i32, i32, i32
  }
  func.func @transform_6(%arg0: i32, %arg1: i32) -> (i32, i32, i32) {
    %c0_i32 = arith.constant 0 : i32
    %c0_i32_0 = arith.constant 0 : i32
    %c0_i32_1 = arith.constant 0 : i32
    return %arg1, %c0_i32, %c0_i32_0 : i32, i32, i32
  }
  func.func @transform_7(%arg0: i32, %arg1: i32) -> (i32, i32, i32) {
    %c0_i32 = arith.constant 0 : i32
    %c0_i32_0 = arith.constant 0 : i32
    %c0_i32_1 = arith.constant 0 : i32
    return %arg1, %c0_i32, %c0_i32_0 : i32, i32, i32
  }
  func.func @transform_8(%arg0: i32, %arg1: i32) -> (i32, i32, i32) {
    %c0_i32 = arith.constant 0 : i32
    %c0_i32_0 = arith.constant 0 : i32
    %c0_i32_1 = arith.constant 0 : i32
    return %arg1, %c0_i32, %c0_i32_0 : i32, i32, i32
  }
  func.func @transform_9(%arg0: i32, %arg1: i32) -> (i32, i32, i32) {
    %c0_i32 = arith.constant 0 : i32
    %c0_i32_0 = arith.constant 0 : i32
    %c0_i32_1 = arith.constant 0 : i32
    return %arg1, %c0_i32, %c0_i32_0 : i32, i32, i32
  }
  func.func @transform_10(%arg0: i32, %arg1: i32) -> (i32, i32, i32) {
    %c0_i32 = arith.constant 0 : i32
    %c0_i32_0 = arith.constant 0 : i32
    %c0_i32_1 = arith.constant 0 : i32
    return %arg1, %c0_i32, %c0_i32_0 : i32, i32, i32
  }
  func.func @transform_11(%arg0: i32, %arg1: i32) -> (i32, i32, i32) {
    %c0_i32 = arith.constant 0 : i32
    %c0_i32_0 = arith.constant 0 : i32
    %c0_i32_1 = arith.constant 0 : i32
    return %arg1, %c0_i32, %c0_i32_0 : i32, i32, i32
  }
  func.func @transform_12(%arg0: i32, %arg1: i32) -> (i32, i32, i32) {
    %c0_i32 = arith.constant 0 : i32
    %c0_i32_0 = arith.constant 0 : i32
    %c0_i32_1 = arith.constant 0 : i32
    return %arg1, %c0_i32, %c0_i32_0 : i32, i32, i32
  }
  func.func @transform_13(%arg0: i32, %arg1: i32) -> (i32, i32, i32) {
    %c0_i32 = arith.constant 0 : i32
    %c0_i32_0 = arith.constant 0 : i32
    %c0_i32_1 = arith.constant 0 : i32
    return %arg1, %c0_i32, %c0_i32_0 : i32, i32, i32
  }
  func.func @transform_14(%arg0: i32, %arg1: i32) -> (i32, i32, i32) {
    %c0_i32 = arith.constant 0 : i32
    %c0_i32_0 = arith.constant 0 : i32
    %c0_i32_1 = arith.constant 0 : i32
    return %arg0, %c0_i32, %c0_i32_0 : i32, i32, i32
  }
}

</mosaic_0001>

<bundles_post_ra>
// kernel: tpu_custom_call.1
= control target key start
LH: loop header
LB: loop body
LE: loop exit
PB: predicated region body
PF: predicated region fallthrough
CT: control target
= control target key end

     0   :  { %s2679_s0 = inlined_call_operand.hbm [shape: f32[2,1,8], index: 0, kind: input, shape index: {}]   ;;  %s2680_s1 = inlined_call_operand.hbm [shape: f32[2,8,32], index: 1, kind: input, shape index: {}]   ;;  %s2681_s2 = inlined_call_operand.vmem [shape: f32[2,1,32], index: 2, kind: input, shape index: {}]   ;;  %s2682_s3 = inlined_call_operand.vmem [shape: f32[2,1,32], index: 3, kind: input, shape index: {}]   ;;  %s2683_s4 = inlined_call_operand.vmem [shape: bf16[2,32,96], index: 4, kind: input, shape index: {}]   ;;  %s2684_s5 = inlined_call_operand.vmem [shape: f32[2,1,96], index: 5, kind: input, shape index: {}]   ;;  %s2685_s6 = inlined_call_operand.vmem [shape: bf16[2,32,32], index: 6, kind: input, shape index: {}]   ;;  %s2686_s7 = inlined_call_operand.vmem [shape: f32[2,1,32], index: 7, kind: input, shape index: {}]   ;;  %s2687_s8 = inlined_call_operand.vmem [shape: f32[2,1,32], index: 8, kind: input, shape index: {}]   ;;  %s2688_s9 = inlined_call_operand.vmem [shape: f32[2,1,32], index: 9, kind: input, shape index: {}]   ;;  %s2689_s10 = inlined_call_operand.vmem [shape: bf16[2,32,64], index: 10, kind: input, shape index: {}]   ;;  %s2690_s11 = inlined_call_operand.hbm [shape: f32[2,1,64], index: 11, kind: input, shape index: {}]   ;;  %s2691_s12 = inlined_call_operand.vmem [shape: bf16[2,64,32], index: 12, kind: input, shape index: {}]   ;;  %s2692_s13 = inlined_call_operand.vmem [shape: f32[2,1,32], index: 13, kind: input, shape index: {}]   ;;  %s2693_s14 = inlined_call_operand.hbm [shape: f32[2,8,32], index: 14, kind: output, shape index: {}]  }
   0x1   :  { %2716 = sst [smem:[#allocation30_spill]] %s2679_s0 }
   0x2   :  { %2717 = sst [smem:[#allocation31_spill]] %s2680_s1 }
   0x3   :  { %2718 = sst [smem:[#allocation32_spill]] %s2683_s4 }
   0x4   :  { %2719 = sst [smem:[#allocation33_spill]] %s2685_s6 }
   0x5   :  { %2720 = sst [smem:[#allocation34_spill]] %s2686_s7 }
   0x6   :  { %2721 = sst [smem:[#allocation35_spill]] %s2687_s8 }
   0x7   :  { %2722 = sst [smem:[#allocation36_spill]] %s2688_s9 }
   0x8   :  { %2723 = sst [smem:[#allocation37_spill]] %s2689_s10 }
   0x9   :  { %2724 = sst [smem:[#allocation38_spill]] %s2690_s11 }
   0xa   :  { %2725 = sst [smem:[#allocation39_spill]] %s2691_s12 }
   0xb   :  { %2726 = sst [smem:[#allocation40_spill]] %s2692_s13 }
   0xc   :  { %2727 = sst [smem:[#allocation41_spill]] %s2693_s14 }
   0xd   :  { %19 = vsyncpa [#allocation3], 0 }
   0xe   :  { %21 = vsyncpa [#allocation3 + $0x1], 0 }
   0xf   :  { %22 = vsyncpa [#allocation6], 0 }
  0x10   :  { %24 = vsyncpa [#allocation6 + $0x1], 0 }
  0x11   :  { %25 = vsyncpa [#allocation4], 0 }
  0x12   :  { %27 = vsyncpa [#allocation4 + $0x1], 0  ;;  %s2182_s29 = smov 0   ;;  %s2184_s30 = smov 0  }
  0x13   :  { %s2186_s15 = smov 0   ;;  %s2188_s16 = smov 0  }
  0x14   :  { %s2190_s17 = smov 0   ;;  %s2192_s18 = smov 0  }
  0x15   :  { %s2194_s19 = smov 0   ;;  %s2196_s20 = smov 0  }
  0x16   :  { %s2198_s21 = smov 0   ;;  %s2200_s22 = smov 0  }
  0x17   :  { %s2202_s23 = smov 0  }
  0x18 LB: > { %2728 = sst [smem:[#allocation13_spill]] %s2056_s30  ;;  %s2238_s24 = sadd.s32 4294967295, %s2092_s23   ;;  %s2092_s23 = sphi %s2202_s23, %s33_s23   ;;  %s2088_s22 = sphi %s2200_s22, %s2800_s22   ;;  %s2084_s21 = sphi %s2198_s21, %s2799_s21   ;;  %s2080_s20 = sphi %s2196_s20, %s2798_s20   ;;  %s2076_s19 = sphi %s2194_s19, %s2797_s19   ;;  %s2072_s18 = sphi %s2192_s18, %s2796_s18   ;;  %s2068_s17 = sphi %s2190_s17, %s2795_s17   ;;  %s2064_s16 = sphi %s2188_s16, %s2794_s16   ;;  %s2060_s15 = sphi %s2186_s15, %s2793_s15   ;;  %s2056_s30 = sphi %s2184_s30, %s2792_s30   ;;  %s2052_s29 = sphi %s2182_s29, %s2791_s29  }
  0x19   : > { %2729 = sst [smem:[#allocation14_spill]] %s2060_s15  ;;  %s1590_s25 = sadd.s32 4294967294, %s2092_s23  }
  0x1a   : > { %2730 = sst [smem:[#allocation15_spill]] %s2064_s16  ;;  %p59_p0 = scmp.ne.s32.totalorder %s2072_s18, %s2068_s17 }
  0x1b   : > { %2731 = sst [smem:[#allocation16_spill]] %s2068_s17  ;;  %p2701_p1 = scmp.eq.s32.totalorder %s2092_s23, 0 }
  0x1c   : > { %2732 = sst [smem:[#allocation17_spill]] %s2072_s18  ;;  %p65_p2 = scmp.ne.s32.totalorder %s2068_s17, %s2064_s16 }
  0x1d   : > { %2733 = sst [smem:[#allocation18_spill]] %s2080_s20  ;;  %p2700_p3 = scmp.eq.s32.totalorder %s2238_s24, 0 }
  0x1e   : > { %2734 = sst [smem:[#allocation19_spill]] %s2084_s21  ;;  %p61_p4 = por %p2701_p1, %p59_p0 }
  0x1f   : > { %2735 = sst [smem:[#allocation20_spill]] %s2088_s22  ;;  %p427_p5 = scmp.eq.s32.totalorder %s2238_s24, 3 }
  0x20   : > { %2736 = sst [smem:[#allocation21_spill]] %s2092_s23  ;;  %p2254_p6 = por %p2700_p3, %p65_p2 }
  0x21   : > { %p433_p7 = scmp.eq.s32.totalorder %s1590_s25, 3  ;;  %p2258_p8 = por %p427_p5, %p59_p0 }
  0x22   : > { %s2737_s28 = scalar_select %p2254_p6, 1, 0 }
  0x23   : > { %s2738_s14 = scalar_select %p2258_p8, 1, 0 }
  0x24   : > { %p2262_p9 = por %p433_p7, %p65_p2  ;;  %p2699_p10 = scmp.lt.s32.totalorder %s2092_s23, 4 }
  0x25   : > { %2739 = sst [smem:[#allocation22_spill]] %s2738_s14  ;;  %s2268_s26 = sand.u32 1, %s2072_s18  }
  0x26   : > { %s2740_s27 = scalar_select %p2262_p9, 1, 0 }
  0x27   : > { %s470_s16 = sand.u32 1, %s2092_s23   ;;  %p2273_p11 = pnand %p2699_p10, %p61_p4 }
  0x28   : > { %2741 = sst [smem:[#allocation23_spill]] %s2740_s27  ;;  %s1594_s25 = sshll.u32 %s2268_s26, 3 }
  0x29   : > { %s1595_s12 = sshll.u32 %s2088_s22, 7  ;;  %s2743_s1 = sld [smem:[#allocation31_spill]] }
  0x2a   : > { %s474_s27 = scalar_lea.vmem [#allocation5], %s1594_s25  ;;  %s2287_s8 = scalar_lea.sflag [#allocation6], %s470_s16 }
  0x2b   : > { %s481_s9 = sshll.u32 %s474_s27, 4  ;;  %p1874_p0 = pneg %p2273_p11  ;;  %s2284_s9 = int_to_ptr.vmem [resolvable:$true] %s481_s9 }
  0x2f   : > { %s2282_s10 = scalar_lea.hbm %s2743_s1, %s1595_s12  ;;  %s1877_s14 = scalar_lea.hbm %s2743_s1, 256 }
  0x30   : > { %s1872_s7 = scalar_lea.hbm %s2282_s10, 128  ;;  %p1878_p5 = scmp.lt.u32.totalorder %s2282_s10, %s2743_s1 }
  0x31   : > { %p1873_p13 = scmp.ne.s32.totalorder %s2282_s10, %s1872_s7  ;;  %p1879_p7 = scmp.lt.u32.totalorder %s1877_s14, %s1872_s7 }
  0x32   : > { %p1881_p3 = scmp.lt.u32.totalorder %s1872_s7, %s2282_s10 }
  0x33   : > { %p1875_p2 = pnand %p1874_p0, %p1873_p13  ;;  %p1880_p10 = por %p1879_p7, %p1878_p5 }
  0x35   : > { %p1876_p4 = pneg %p1875_p2  ;;  %p1882_p1 = por %p1881_p3, %p1880_p10 }
  0x37   : > { %p1883_p12 = pnand %p1882_p1, %p1876_p4 }
  0x39   : > { %1886 = shalt.err (!%p1883_p12)
}
  0x3a   : > { %s1887_s16 = scalar_lea.vmem %s2284_s9, 128  ;;  %s2094_s27 = smov [#allocation5]  }
  0x3b   : > { %p1888_p13 = scmp.ne.s32.totalorder %s2284_s9, %s1887_s16  ;;  %s1892_s12 = sshll.u32 %s2094_s27, 4  ;;  %s1893_s12 = int_to_ptr.vmem [resolvable:$false] %s1892_s12 }
  0x3c   : > { %s1894_s6 = scalar_lea.vmem %s1893_s12, 256  ;;  %p1895_p8 = scmp.lt.s32.totalorder %s2284_s9, %s1893_s12 }
  0x3d   : > { %p1890_p2 = pnand %p1888_p13, %p1874_p0  ;;  %p1896_p5 = scmp.lt.s32.totalorder %s1894_s6, %s1887_s16 }
  0x3f   : > { %p1891_p9 = pneg %p1890_p2  ;;  %p1897_p7 = por %p1896_p5, %p1895_p8 }
  0x41   : > { %p1898_p3 = pnand %p1897_p7, %p1891_p9 }
  0x43   : > { %1901 = shalt.err (!%p1898_p3)
}
  0x44   : > { %1739 = dma.hbm_to_vmem [thread:$0]  (!%p2273_p11), %s2282_s10, 128, %s2284_s9, %s2287_s8  }
  0x45   : > { %p577_p1 = scmp.lt.s32.totalorder %s2092_s23, 5  ;;  %p2744_p10 = scmp.ge.s32.totalorder %s2092_s23, 1 }
  0x46   : > { %s1593_s13 = sshll.u32 %s2088_s22, 4  ;;  %s456_s14 = scalar_lea.vmem [#allocation2], %s2268_s26 }
  0x47   : > { %p2318_p12 = pnand %p2744_p10, %p577_p1  ;;  %s463_s25 = sshll.u32 %s456_s14, 4  ;;  %s464_s25 = int_to_ptr.vmem [resolvable:$true] %s463_s25 }
  0x48   : > { %s2746_s0 = sld [smem:[#allocation30_spill]]  ;;  %s454_s9 = scalar_lea.sflag [#allocation3], %s2268_s26 }
  0x49   : > { %s2745_s7 = scalar_select %p2318_p12, 1, 0 }
  0x4e   : > { %s2327_s12 = scalar_lea.hbm %s2746_s0, %s1593_s13  ;;  %s1907_s14 = scalar_lea.hbm %s2746_s0, 32 }
  0x4f   : > { %s1902_s10 = scalar_lea.hbm %s2327_s12, 16  ;;  %p1908_p13 = scmp.lt.u32.totalorder %s2327_s12, %s2746_s0 }
  0x50   : > { %p1903_p8 = scmp.ne.s32.totalorder %s2327_s12, %s1902_s10  ;;  %p1909_p2 = scmp.lt.u32.totalorder %s1907_s14, %s1902_s10 }
  0x51   : > { %p1911_p7 = scmp.lt.u32.totalorder %s1902_s10, %s2327_s12 }
  0x52   : > { %p1905_p9 = pnand %p1903_p8, %p1874_p0  ;;  %p1910_p5 = por %p1909_p2, %p1908_p13 }
  0x54   : > { %p1906_p4 = pneg %p1905_p9  ;;  %p1912_p3 = por %p1911_p7, %p1910_p5 }
  0x56   : > { %p1913_p1 = pnand %p1912_p3, %p1906_p4 }
  0x58   : > { %1916 = shalt.err (!%p1913_p1)
}
  0x59   : > { %s1917_s26 = scalar_lea.vmem %s464_s25, 16  ;;  %s2095_s13 = smov [#allocation2]  }
  0x5a   : > { %p1918_p10 = scmp.ne.s32.totalorder %s464_s25, %s1917_s26  ;;  %s1922_s1 = sshll.u32 %s2095_s13, 4  ;;  %s1923_s1 = int_to_ptr.vmem [resolvable:$false] %s1922_s1 }
  0x5b   : > { %s1924_s27 = scalar_lea.vmem %s1923_s1, 32  ;;  %p1925_p6 = scmp.lt.s32.totalorder %s464_s25, %s1923_s1 }
  0x5c   : > { %p1920_p8 = pnand %p1918_p10, %p1874_p0  ;;  %p1926_p12 = scmp.lt.s32.totalorder %s1924_s27, %s1917_s26 }
  0x5e   : > { %p1921_p9 = pneg %p1920_p8  ;;  %p1927_p2 = por %p1926_p12, %p1925_p6 }
  0x60   : > { %p1928_p13 = pnand %p1927_p2, %p1921_p9 }
  0x62   : > { %1931 = shalt.err (!%p1928_p13)
}
  0x63   : > { %1736 = dma.hbm_to_vmem [thread:$0]  (!%p2273_p11), %s2327_s12, 16, %s464_s25, %s454_s9  }
  0x64   : > { %s42_s4 = sadd.s32 1, %s2084_s21  ;;  %s338_s10 = sadd.s32 1, %s2060_s15 }
  0x65   : > { %p43_p6 = scmp.ge.s32.totalorder %s42_s4, 2  ;;  %p345_p0 = scmp.ne.s32.totalorder %s2060_s15, %s2056_s30 }
  0x66   : > { %p351_p12 = scmp.ne.s32.totalorder %s2056_s30, %s2052_s29  ;;  %s550_s20 = sand.u32 1, %s2060_s15  }
  0x67   : > { %s2802_s4 = smov (%p43_p6, %s42_s4), 0  ;;  %s2748_s6 = sadd.s32 1, %s2088_s22 }
  0x68   : > { %2747 = sst [smem:[#allocation24_spill]] %s2802_s4  ;;  %s2804_s6 = smov (!%p43_p6, %s2748_s6), %s2088_s22 }
  0x69   : > { %s335_s14 = ssub.s32 %s2084_s21, %s2802_s4  ;;  %p2749_p4 = scmp.eq.s32.totalorder %s2092_s23, 0 }
  0x6a   : > { %p47_p11 = scmp.ge.s32.totalorder %s2804_s6, 2  ;;  %p336_p7 = scmp.eq.s32.totalorder %s335_s14, 0 }
  0x6b   : > { %p347_p5 = por %p345_p0, %p2749_p4  ;;  %p2750_p3 = scmp.eq.s32.totalorder %s2238_s24, 0 }
  0x6c   : > { %s2806_s6 = smov (%p47_p11, %s2804_s6), 0  ;;  %s1596_s9 = sshll.u32 %s2084_s21, 4 }
  0x6d   : > { %p2367_p1 = por %p351_p12, %p2750_p3  ;;  %2752 = sst [smem:[#allocation25_spill]] %s2806_s6 }
  0x6e   : > { %s2374_s29 = scalar_select %p336_p7, %s2060_s15, %s338_s10  }
  0x6f   : > { %s2751_s25 = scalar_select %p2367_p1, 1, 0 }
  0x70   : > { %2753 = sst [smem:[#allocation26_spill]] %s2374_s29  ;;  %s49_s12 = ssub.s32 %s2088_s22, %s2806_s6 }
  0x71   : > { %p50_p10 = scmp.eq.s32.totalorder %s49_s12, 0  ;;  %s2754_s11 = sld [smem:[#allocation38_spill]] }
  0x72   : > { %s551_s1 = scalar_lea.vmem [#allocation7], %s550_s20  ;;  %p2755_p8 = scmp.lt.s32.totalorder %s2092_s23, 4 }
  0x73   : > { %s558_s27 = sshll.u32 %s551_s1, 4  ;;  %s2757_s10 = sadd.s32 1, %s2072_s18  ;;  %s559_s27 = int_to_ptr.vmem [resolvable:$true] %s558_s27 }
  0x74   : > { %p2386_p9 = pnand %p2755_p8, %p347_p5 }
  0x75   : > { %s2393_s12 = scalar_select %p50_p10, %s2072_s18, %s2757_s10  }
  0x76   : > { %p1934_p13 = pneg %p2386_p9 }
  0x77   : > { %s2382_s13 = scalar_lea.hbm %s2754_s11, %s1596_s9  ;;  %2758 = sst [smem:[#allocation27_spill]] %s2393_s12 }
  0x78   : > { %s1932_s16 = scalar_lea.hbm %s2382_s13, 16  ;;  %s1937_s26 = scalar_lea.hbm %s2754_s11, 32 }
  0x79   : > { %p1933_p2 = scmp.ne.s32.totalorder %s2382_s13, %s1932_s16  ;;  %p1938_p12 = scmp.lt.u32.totalorder %s2382_s13, %s2754_s11 }
  0x7a   : > { %p1939_p4 = scmp.lt.u32.totalorder %s1937_s26, %s1932_s16  ;;  %p1941_p11 = scmp.lt.u32.totalorder %s1932_s16, %s2382_s13 }
  0x7b   : > { %p1935_p6 = pnand %p1934_p13, %p1933_p2 }
  0x7c   : > { %p1940_p5 = por %p1939_p4, %p1938_p12 }
  0x7d   : > { %p1936_p0 = pneg %p1935_p6 }
  0x7e   : > { %p1942_p7 = por %p1941_p11, %p1940_p5 }
  0x80   : > { %p1943_p3 = pnand %p1942_p7, %p1936_p0 }
  0x82   : > { %1946 = shalt.err (!%p1943_p3)
}
  0x83   : > { %s1947_s10 = scalar_lea.vmem %s559_s27, 16  ;;  %s2096_s6 = smov [#allocation7]  }
  0x84   : > { %p1948_p10 = scmp.ne.s32.totalorder %s559_s27, %s1947_s10  ;;  %s1952_s20 = sshll.u32 %s2096_s6, 4  ;;  %s1953_s20 = int_to_ptr.vmem [resolvable:$false] %s1952_s20 }
  0x85   : > { %s1954_s9 = scalar_lea.vmem %s1953_s20, 32  ;;  %p1955_p6 = scmp.lt.s32.totalorder %s559_s27, %s1953_s20 }
  0x86   : > { %p1950_p8 = pnand %p1948_p10, %p1934_p13  ;;  %p1956_p1 = scmp.lt.s32.totalorder %s1954_s9, %s1947_s10 }
  0x88   : > { %p1951_p2 = pneg %p1950_p8  ;;  %p1957_p4 = por %p1956_p1, %p1955_p6 }
  0x8a   : > { %p1958_p12 = pnand %p1957_p4, %p1951_p2 }
  0x8c   : > { %1961 = shalt.err (!%p1958_p12)
}
  0x8d   : > { %1742 = dma.hbm_to_vmem [thread:$0]  (!%p2386_p9), %s2382_s13, 16, %s559_s27, %s2287_s8  }
  0x8e   : > { %p2759_p0 = scmp.ne.s32.totalorder %s2745_s7, 0 }
  0x90   : > { %581 = sbr.rel (%p2759_p0) target bundleno = 2709 (0xa95), region = 76 }
  0x97   : > { %s2420_s0 = sand.u32 1, %s2068_s17   ;;  %p2760_p13 = scmp.ne.s32.totalorder %s2737_s28, 0 }
  0x98   : > { %s584_s6 = scalar_lea.sflag [#allocation3], %s2420_s0 }
  0x99   : > { %2035 = dma.done.wait (%p2760_p13), %s584_s6, 16  }
  0x9a   : > { %2037 = vsyncadd (%p2760_p13), %s584_s6, 4294967280  ;;  %s591_s8 = sand.u32 1, %s2238_s24   ;;  %s1598_s13 = sshll.u32 %s2420_s0, 3 }
  0x9b   : > { %s592_s7 = scalar_lea.sflag [#allocation6], %s591_s8  ;;  %s595_s27 = scalar_lea.vmem [#allocation5], %s1598_s13 }
  0x9c   : > { %2039 = dma.done.wait (%p2760_p13), %s592_s7, 128  }
  0x9d   : > { %2041 = vsyncadd (%p2760_p13), %s592_s7, 4294967168  ;;  %s602_s14 = sand.u32 1, %s2056_s30   ;;  %p2762_p1 = scmp.ne.s32.totalorder %s2751_s25, 0 }
  0x9e   : > { %s2435_s26 = scalar_lea.vmem [#allocation7], %s602_s14 }
  0x9f   : > { %2761 = sst [smem:[#allocation28_spill]] %s2435_s26 }
  0xa0   : > { %2043 = dma.done.wait (%p2762_p1), %s592_s7, 16  }
  0xa1   : > { %2045 = vsyncadd (%p2762_p1), %s592_s7, 4294967280  ;;  %p697_p9 = scmp.lt.s32.totalorder %s2076_s19, 1  ;;  %s2763_s10 = sld [smem:[#allocation32_spill]] }
  0xa2   : > { %s2764_s21 = sld [smem:[#allocation33_spill]]  ;;  %s2767_s29 = sld [smem:[#allocation35_spill]] }
  0xa3   : > { %s2443_s24 = scalar_select %p697_p9, %s2076_s19, 1 }
  0xa4   : > { %s2768_s14 = sld [smem:[#allocation36_spill]]  ;;  %s2770_s26 = sld [smem:[#allocation40_spill]] }
  0xa5   : > { %s1639_s6 = sshll.u32 %s2443_s24, 4  ;;  %s1642_s22 = sshll.u32 %s2443_s24, 5 }
  0xa6   : > { %s2771_s28 = sld [smem:[#allocation39_spill]]  ;;  %p1608_p5 = scmp.ne.s32.totalorder %s2076_s19, 0 }
  0xa7   : > { %s2461_s11 = scalar_lea.vmem %s2763_s10, %s1639_s6  ;;  %s2769_s10 = sld [smem:[#allocation37_spill]]  ;;  %v743_v0 = vld [vmem:[%s595_s27] sm:$0xff] (!%p1608_p5)  ;;  %vm744_vm0 = vcmask (!%p1608_p5), 261120  }
  0xa8   : > { %s2466_s12 = scalar_lea.vmem %s2764_s21, %s1639_s6  ;;  %s721_s15 = scalar_lea.vmem %s2767_s29, %s2443_s24 }
  0xa9   : > { %2765 = sst [smem:[#allocation29_spill]] %s2466_s12  ;;  %s2495_s29 = scalar_lea.vmem [#allocation8], %s1598_s13 }
  0xaa   : > { %s724_s30 = scalar_lea.vmem %s2768_s14, %s2443_s24  ;;  %s737_s12 = scalar_lea.vmem %s2770_s26, %s2443_s24  ;;  %745 = vst.msk [vmem:[%s2495_s29] sm:$0xff] (!%p1608_p5), %vm744_vm0, %v743_v0 }
  0xab   : > { %742 = sbr.rel (%p1608_p5) target bundleno = 178 (0xb2), region = 92 }
  0xac   : > { %s2493_s25 = scalar_lea.vmem %s2771_s28, %s1642_s22 }
  0xad   : > { %s2483_s23 = scalar_lea.vmem %s2769_s10, %s1639_s6 }
  0xb2 PF: > { %v2500_v1 = vld [vmem:[%s2495_s29] sm:$0xff]  ;;  %vm776_vm1 = vcmask 261120   ;;  %v2097_v9 = vmov 0.0   ;;  %vm2098_vm2 = vmmov 0   ;;  %v1847_v10 = vld [vmem:[%s2461_s11 + $0x8] sm:$0xff]   ;;  %s2773_s9 = scalar_lea.vmem %s2682_s3, %s2443_s24  ;;  %s2774_s20 = scalar_lea.vmem %s2684_s5, %s2443_s24  ;;  %vm886_vm3 = vcmask 130048  }
  0xb3   : > { %v777_v2 = vsel %vm776_vm1, %v2500_v1, 0.0  ;;  %v1846_v8 = vld [vmem:[%s2461_s11] sm:$0xff]   ;;  %1665 = vmatprep.subr.bf16.mxu0 %v2097_v9  ;;  %1669 = vmatprep.mubr.msk.bf16.mxu0 %vm2098_vm2, %v2097_v9  ;;  %s2772_s11 = scalar_lea.vmem %s2681_s2, %s2443_s24  ;;  %s2099_s8 = smov 112   ;;  %v867_v33 = vlaneseq  ;;  %v2102_v41 = vmov -1e+09   ;;  %vm933_vm5 = vcmask 64512  }
  0xb4   : > { %778 = vadd.xlane.f32.xlu0 %v777_v2  ;;  %1666 = vmatpush3.bf16.msra.mxu0 %v1846_v8  ;;  %v1609_v15 = vld [vmem:[%s2772_s11] ss:$0 sm:$0xff]  ;;  %s2100_s7 = smov 96   ;;  %s2101_s16 = smov 80   ;;  %vm951_vm6 = vcmask 1043456   ;;  %vm1300_vm7 = vcmask 523264  }
  0xb5   : > { %1673 = vmatprep.subr.bf16.mxu1 %v2097_v9  ;;  %1667 = vmatprep.subr.bf16.mxu0 %v2097_v9  ;;  %v1610_v17 = vld [vmem:[%s2773_s9] ss:$0 sm:$0xff]  ;;  %s2775_s1 = scalar_lea.vmem [#allocation2], %s2420_s0  ;;  %v868_v35 = vshrl.u32 %v867_v33, 7  ;;  %v870_v37 = vand.u32 127, %v867_v33  ;;  %s2103_s10 = smov 48  }
  0xb6   : > { %1675 = vmatprep.mubr.msk.bf16.mxu1 %vm2098_vm2, %v2097_v9  ;;  %v1611_v21 = vld [vmem:[%s2774_s20] ss:$0 sm:$0xff]  ;;  %s2104_s22 = smov 64   ;;  %s2776_s21 = sld [smem:[#allocation29_spill]] }
  0xb7   : > { %v747_v34 = vld [vmem:[%s2775_s1] sm:$0x1]  ;;  %v878_v39 = vsub.s32 0, %v868_v35  ;;  %vm871_vm4 = vcmp.ge.s32.totalorder %v868_v35, %v870_v37  ;;  %s2105_s4 = smov 16   ;;  %s2777_s28 = sld [smem:[#allocation34_spill]] }
  0xb8   : > { %1668 = vmatpush3.bf16.msra.mxu0 %v1847_v10  ;;  %v873_v36 = vsub.f32 1.0, %v747_v34  ;;  %v872_v42 = vsel %vm871_vm4, 0.0, %v2102_v41  ;;  %s2784_s20 = sld [smem:[#allocation22_spill]] }
  0xb9   : > { %1679 = vmatprep.subr.bf16.mxu0 %v2097_v9 }
  0xba   : > { %v874_v38 = vmul.f32 -1e+09, %v873_v36 }
  0xbc   : > { %v879_v40 = vrot.slane %v874_v38, %v878_v39 }
  0xbd   : > { %s2778_s19 = scalar_lea.vmem %s2777_s28, %s2443_s24 }
  0xbe   : > { %v881_v43 = vadd.f32 %v879_v40, %v872_v42  ;;  %v1850_v42 = vld [vmem:[%s2483_s23] sm:$0xff]   ;;  %p2786_p7 = scmp.ne.s32.totalorder %s2784_s20, 0 }
 0x141   : > { %v779_v3 = vpop.xlane.xlu0 %778 }
 0x142   : > { %v781_v4 = vmul.f32 0.03125, %v779_v3 }
 0x144   : > { %v782_v5 = vsub.f32 %v2500_v1, %v781_v4 }
 0x146   : > { %v783_v6 = vmul.f32 %v782_v5, %v782_v5 }
 0x148   : > { %v784_v7 = vsel %vm776_vm1, %v783_v6, 0.0 }
 0x149   : > { %785 = vadd.xlane.f32.xlu0 %v784_v7 }
 0x1d6   : > { %v786_v11 = vpop.xlane.xlu0 %785 }
 0x1d7   : > { %v787_v12 = vmul.f32 0.03125, %v786_v11 }
 0x1d9   : > { %v788_v13 = vadd.f32 1e-05, %v787_v12 }
 0x1db   : > { %1856 = vrsqrt.f32 %v788_v13 }
 0x1e5   : > { %v1857_v14 = vpop.eup %1856 }
 0x1e6   : > { %v790_v16 = vmul.f32 %v1857_v14, %v782_v5 }
 0x1e8   : > { %v797_v18 = vmul.f32 %v1609_v15, %v790_v16  ;;  %v1848_v16 = vld [vmem:[%s2776_s21] sm:$0xff]  }
 0x1ea   : > { %v804_v19 = vadd.f32 %v1610_v17, %v797_v18  ;;  %v1849_v17 = vld [vmem:[%s2776_s21 + $0x8] sm:$0xff]   ;;  %s2106_s21 = smov [#allocation8]  }
 0x1ec   : > { %v805_v20 = vpack.c.bf16 %v804_v19, %v804_v19 }
 0x1ee   : > { %1670 = vmatmul.mubr.msk.bf16.vlgmr.msra.gmra.mrb[0].mxu0 %vm776_vm1, %v805_v20 }
 0x1ef   : > { %1681 = vmatprep.mubr.msk.bf16.mxu0 %vm2098_vm2, %v2097_v9 }
 0x2c1   : > { %v861_v22 = vpop.f32.mrb[0].mxu0 }
 0x2c2   : > { %v862_v23 = vadd.f32 %v1611_v21, %v861_v22  ;;  %v1671_v24 = vpop.f32.mrb[1].mxu0 }
 0x2c3   : > { %v864_v25 = vpop.f32.mrb[2].mxu0 }
 0x2c4   : > { %v2534_v26 = vpack.c.bf16 %v862_v23, %v862_v23  ;;  %v1672_v27 = vpop.f32.mrb[3].mxu0 }
 0x2c6   : > { %995 = vrot.lane.b32.xlu0 %v2534_v26, %s2099_s8  ;;  %884 = vrot.lane.b32.xlu1 %v2534_v26, %s2100_s7  ;;  %s1360_s7 = sshll.u32 %s2495_s29, 4  ;;  %s2616_s7 = int_to_ptr.vmem [resolvable:$true] %s1360_s7 }
 0x2c7   : > { %s1962_s24 = scalar_lea.vmem %s2616_s7, 128 }
 0x2c8   : > { %p1963_p11 = scmp.ne.s32.totalorder %s2616_s7, %s1962_s24 }
 0x2ca   : > { %997 = vrot.lane.b32.xlu1 %v2534_v26, %s2101_s16  ;;  %p1964_p3 = pnand %p1963_p11, %p2786_p7 }
 0x2cc   : > { %p1965_p10 = pneg %p1964_p3 }
 0x338   : > { %v885_v28 = vpop.permute.xlu1 %884  ;;  %v996_v32 = vpop.permute.xlu0 %995 }
 0x339   : > { %v891_v29 = vsel %vm886_vm3, %v885_v28, 0 }
 0x33a   : > { %1674 = vmatpush3.bf16.xpose.msra.mxu1 %v891_v29  ;;  %v1619_v29 = vld [vmem:[%s2778_s19] ss:$0 sm:$0xff] }
 0x33b   : > { %1685 = vmatprep.subr.bf16.mxu1 %v2097_v9 }
 0x33c   : > { %v998_v30 = vpop.permute.xlu1 %997 }
 0x33d   : > { %v1003_v31 = vsel %vm886_vm3, %v998_v30, 0 }
 0x341   : > { %1676 = vmatmul.mubr.msk.bf16.vlgmr.msra.gmra.mrb[0].mxu1 %vm886_vm3, %v2534_v26 }
 0x342   : > { %1686 = vmatpush3.bf16.xpose.msra.mxu1 %v1003_v31  ;;  %1687 = vmatprep.mubr.msk.bf16.mxu1 %vm2098_vm2, %v2097_v9 }
 0x343   : > { %1697 = vmatprep.subr.bf16.mxu1 %v2097_v9 }
 0x349   : > { %1688 = vmatmul.mubr.msk.bf16.vlgmr.msra.gmra.mrb[4].mxu1 %vm886_vm3, %v996_v32 }
 0x34a   : > { %1701 = vmatprep.mubr.msk.bf16.mxu1 %vm2098_vm2, %v2097_v9  ;;  %1698 = vmatpush3.bf16.msra.mxu1 %v1848_v16 }
 0x34b   : > { %1699 = vmatprep.subr.bf16.mxu1 %v2097_v9 }
 0x34e   : > { %1700 = vmatpush3.bf16.msra.mxu1 %v1849_v17 }
 0x34f   : > { %1713 = vmatprep.subr.bf16.mxu1 %v2097_v9 }
 0x414   : > { %v927_v44 = vpop.f32.mrb[0].mxu1 }
 0x415   : > { %v928_v45 = vadd.f32 %v927_v44, %v881_v43  ;;  %v1677_v46 = vpop.f32.mrb[1].mxu1 }
 0x416   : > { %v930_v47 = vpop.f32.mrb[2].mxu1 }
 0x417   : > { %v1678_v48 = vpop.f32.mrb[3].mxu1  ;;  %v934_v49 = vsel %vm933_vm5, %v928_v45, -inf  ;;  %v1623_v47 = vld [vmem:[%s721_s15] ss:$0 sm:$0xff] }
 0x418   : > { %935 = vmax.xlane.f32.xlu1 %v934_v49  ;;  %v1624_v49 = vld [vmem:[%s724_s30] ss:$0 sm:$0xff]  ;;  %s2782_s30 = sld [smem:[#allocation18_spill]] }
 0x41c   : > { %v1039_v50 = vpop.f32.mrb[4].mxu1 }
 0x41d   : > { %v1040_v51 = vadd.f32 %v1039_v50, %v881_v43  ;;  %v1689_v52 = vpop.f32.mrb[5].mxu1  ;;  %v1851_v43 = vld [vmem:[%s2483_s23 + $0x8] sm:$0xff]   ;;  %s2781_s23 = sld [smem:[#allocation28_spill]] }
 0x41e   : > { %v1042_v53 = vpop.f32.mrb[6].mxu1  ;;  %s1636_s8 = sshll.u32 %s2782_s30, 7 }
 0x41f   : > { %v1690_v54 = vpop.f32.mrb[7].mxu1  ;;  %v1045_v55 = vsel %vm933_vm5, %v1040_v51, -inf  ;;  %v1852_v53 = vld [vmem:[%s2493_s25] sm:$0xff]  }
 0x420   : > { %1046 = vmax.xlane.f32.xlu0 %v1045_v55  ;;  %v1853_v54 = vld [vmem:[%s2493_s25 + $0x8] sm:$0xff]   ;;  %v1854_v55 = vld [vmem:[%s2493_s25 + $0x10] sm:$0xff]  }
 0x436   : > { %1057 = vrot.lane.b32.xlu0 %v2534_v26, %s2103_s10  ;;  %s2785_s10 = sld [smem:[#allocation41_spill]] }
 0x4a5   : > { %v936_v56 = vpop.xlane.xlu1 %935 }
 0x4a6   : > { %v937_v57 = vsub.f32 %v928_v45, %v936_v56  ;;  %v1855_v56 = vld [vmem:[%s2493_s25 + $0x18] sm:$0xff]  }
 0x4a8   : > { %v938_v58 = vmul.f32 1.442695, %v937_v57  ;;  %v1625_v57 = vld [vmem:[%s2781_s23] ss:$0 sm:$0xff] }
 0x4aa   : > { %1858 = vpow2.f32 %v938_v58 }
 0x4ad   : > { %v1047_v59 = vpop.xlane.xlu0 %1046 }
 0x4ae   : > { %v1048_v60 = vsub.f32 %v1040_v51, %v1047_v59 }
 0x4b0   : > { %v1049_v61 = vmul.f32 1.442695, %v1048_v60 }
 0x4b1   : > { %v1058_v10 = vpop.permute.xlu0 %1057 }
 0x4b2   : > { %1860 = vpow2.f32 %v1049_v61  ;;  %v1063_v12 = vsel %vm951_vm6, %v1058_v10, 0 }
 0x4b4   : > { %v1859_v62 = vpop.eup %1858 }
 0x4b5   : > { %v940_v63 = vsel %vm933_vm5, %v1859_v62, 0.0 }
 0x4b6   : > { %941 = vadd.xlane.f32.xlu1 %v940_v63 }
 0x4bc   : > { %v1861_v0 = vpop.eup %1860 }
 0x4bd   : > { %v1051_v2 = vsel %vm933_vm5, %v1861_v0, 0.0 }
 0x4be   : > { %1052 = vadd.xlane.f32.xlu1 %v1051_v2 }
 0x4cf   : > { %946 = vrot.lane.b32.xlu1 %v2534_v26, %s2104_s22  ;;  %s2614_s22 = scalar_lea.hbm %s2785_s10, %s1636_s8 }
 0x543   : > { %v942_v3 = vpop.xlane.xlu1 %941 }
 0x544   : > { %1862 = vrcp.f32 %v942_v3 }
 0x54b   : > { %v1053_v4 = vpop.xlane.xlu1 %1052 }
 0x54c   : > { %1864 = vrcp.f32 %v1053_v4 }
 0x54e   : > { %v1863_v5 = vpop.eup %1862 }
 0x54f   : > { %v944_v6 = vmul.f32 %v1863_v5, %v1859_v62  ;;  %v947_v7 = vpop.permute.xlu1 %946 }
 0x550   : > { %v953_v8 = vsel %vm951_vm6, %v947_v7, 0 }
 0x551   : > { %1680 = vmatpush3.bf16.msra.mxu0 %v953_v8  ;;  %v945_v11 = vpack.c.bf16 %v944_v6, %v944_v6  ;;  %v1629_v6 = vld [vmem:[%s737_s12] ss:$0 sm:$0xff]  ;;  %s1347_s12 = scalar_lea.sflag [#allocation4], %s2420_s0 }
 0x552   : > { %1691 = vmatprep.subr.bf16.mxu0 %v2097_v9 }
 0x554   : > { %1682 = vmatmul.mubr.msk.bf16.vlgmr.msra.gmra.mrb[4].mxu0 %vm933_vm5, %v945_v11 }
 0x555   : > { %1692 = vmatpush3.bf16.msra.mxu0 %v1063_v12  ;;  %1693 = vmatprep.mubr.msk.bf16.mxu0 %vm2098_vm2, %v2097_v9 }
 0x556   : > { %v1865_v13 = vpop.eup %1864  ;;  %1705 = vmatprep.subr.bf16.mxu0 %v2097_v9 }
 0x557   : > { %v1055_v14 = vmul.f32 %v1865_v13, %v1861_v0 }
 0x559   : > { %v1056_v15 = vpack.c.bf16 %v1055_v14, %v1055_v14 }
 0x55c   : > { %1694 = vmatmul.mubr.msk.bf16.vlgmr.msra.gmra.mrb[8].mxu0 %vm933_vm5, %v1056_v15 }
 0x55d   : > { %1709 = vmatprep.mubr.msk.bf16.mxu0 %vm2098_vm2, %v2097_v9  ;;  %1706 = vmatpush3.bf16.msra.mxu0 %v1850_v42 }
 0x55e   : > { %1707 = vmatprep.subr.bf16.mxu0 %v2097_v9 }
 0x561   : > { %1708 = vmatpush3.bf16.msra.mxu0 %v1851_v43 }
 0x627   : > { %v989_v18 = vpop.f32.mrb[4].mxu0 }
 0x628   : > { %v1683_v19 = vpop.f32.mrb[5].mxu0 }
 0x629   : > { %v992_v20 = vpop.f32.mrb[6].mxu0 }
 0x62a   : > { %v1684_v21 = vpop.f32.mrb[7].mxu0 }
 0x62f   : > { %v1099_v22 = vpop.f32.mrb[8].mxu0 }
 0x630   : > { %1106 = vrot.lane.b32.xlu1 %v1099_v22, %s2105_s4  ;;  %v1695_v23 = vpop.f32.mrb[9].mxu0  ;;  %s1966_s4 = sshll.u32 %s2106_s21, 4  ;;  %s1967_s4 = int_to_ptr.vmem [resolvable:$false] %s1966_s4 }
 0x631   : > { %v1102_v24 = vpop.f32.mrb[10].mxu0  ;;  %s1968_s18 = scalar_lea.vmem %s1967_s4, 256  ;;  %p1969_p8 = scmp.lt.s32.totalorder %s2616_s7, %s1967_s4 }
 0x632   : > { %v1696_v25 = vpop.f32.mrb[11].mxu0  ;;  %p1970_p2 = scmp.lt.s32.totalorder %s1968_s18, %s1962_s24 }
 0x634   : > { %p1971_p6 = por %p1970_p2, %p1969_p8 }
 0x636   : > { %p1972_p4 = pnand %p1971_p6, %p1965_p10 }
 0x6a2   : > { %v1107_v26 = vpop.permute.xlu1 %1106 }
 0x6a3   : > { %v1109_v27 = vsel %vm886_vm3, %v989_v18, %v1107_v26 }
 0x6a4   : > { %v1110_v28 = vpack.c.bf16 %v1109_v27, %v1109_v27 }
 0x6a6   : > { %1702 = vmatmul.mubr.msk.bf16.vlgmr.msra.gmra.mrb[8].mxu1 %vm776_vm1, %v1110_v28 }
 0x6a7   : > { %1721 = vmatprep.mubr.msk.bf16.mxu1 %vm2098_vm2, %v2097_v9  ;;  %1714 = vmatpush3.bf16.msra.mxu1 %v1852_v53 }
 0x6a8   : > { %1715 = vmatprep.subr.bf16.mxu1 %v2097_v9 }
 0x6ab   : > { %1716 = vmatpush3.bf16.msra.mxu1 %v1853_v54 }
 0x6ac   : > { %1717 = vmatprep.subr.bf16.mxu1 %v2097_v9 }
 0x6af   : > { %1718 = vmatpush3.bf16.msra.mxu1 %v1854_v55 }
 0x6b0   : > { %1719 = vmatprep.subr.bf16.mxu1 %v2097_v9 }
 0x6b3   : > { %1720 = vmatpush3.bf16.msra.mxu1 %v1855_v56 }
 0x779   : > { %v1166_v30 = vpop.f32.mrb[8].mxu1 }
 0x77a   : > { %v1167_v31 = vadd.f32 %v1619_v29, %v1166_v30  ;;  %v1703_v32 = vpop.f32.mrb[9].mxu1 }
 0x77b   : > { %v1169_v33 = vpop.f32.mrb[10].mxu1 }
 0x77c   : > { %v1172_v34 = vadd.f32 %v1167_v31, %v2500_v1  ;;  %v1704_v35 = vpop.f32.mrb[11].mxu1 }
 0x77e   : > { %v1173_v36 = vsel %vm776_vm1, %v1172_v34, 0.0 }
 0x77f   : > { %1174 = vadd.xlane.f32.xlu1 %v1173_v36 }
 0x80c   : > { %v1175_v37 = vpop.xlane.xlu1 %1174 }
 0x80d   : > { %v1176_v38 = vmul.f32 0.03125, %v1175_v37 }
 0x80f   : > { %v1177_v39 = vsub.f32 %v1172_v34, %v1176_v38 }
 0x811   : > { %v1178_v40 = vmul.f32 %v1177_v39, %v1177_v39 }
 0x813   : > { %v1179_v41 = vsel %vm776_vm1, %v1178_v40, 0.0 }
 0x814   : > { %1180 = vadd.xlane.f32.xlu0 %v1179_v41 }
 0x8a1   : > { %v1181_v1 = vpop.xlane.xlu0 %1180 }
 0x8a2   : > { %v1182_v44 = vmul.f32 0.03125, %v1181_v1 }
 0x8a4   : > { %v1183_v45 = vadd.f32 1e-05, %v1182_v44 }
 0x8a6   : > { %1866 = vrsqrt.f32 %v1183_v45 }
 0x8b0   : > { %v1867_v46 = vpop.eup %1866 }
 0x8b1   : > { %v1185_v48 = vmul.f32 %v1867_v46, %v1177_v39 }
 0x8b3   : > { %v1192_v50 = vmul.f32 %v1623_v47, %v1185_v48 }
 0x8b5   : > { %v1199_v51 = vadd.f32 %v1624_v49, %v1192_v50 }
 0x8b7   : > { %v1200_v52 = vpack.c.bf16 %v1199_v51, %v1199_v51 }
 0x8b9   : > { %1710 = vmatmul.mubr.msk.bf16.vlgmr.msra.gmra.mrb[12].mxu0 %vm776_vm1, %v1200_v52 }
 0x98c   : > { %v1256_v58 = vpop.f32.mrb[12].mxu0 }
 0x98d   : > { %v1257_v59 = vadd.f32 %v1625_v57, %v1256_v58  ;;  %v1711_v60 = vpop.f32.mrb[13].mxu0 }
 0x98e   : > { %v1259_v61 = vpop.f32.mrb[14].mxu0 }
 0x98f   : > { %v1262_v62 = vmul.f32 -1.702, %v1257_v59  ;;  %v1712_v63 = vpop.f32.mrb[15].mxu0 }
 0x991   : > { %v1263_v0 = vmul.f32 1.442695, %v1262_v62 }
 0x993   : > { %1868 = vpow2.f32 %v1263_v0 }
 0x99d   : > { %v1869_v2 = vpop.eup %1868 }
 0x99e   : > { %v1265_v3 = vadd.f32 1.0, %v1869_v2 }
 0x9a0   : > { %1870 = vrcp.f32 %v1265_v3 }
 0x9aa   : > { %v1871_v4 = vpop.eup %1870 }
 0x9ab   : > { %v1268_v9 = vmul.f32 %v1871_v4, %v1257_v59 }
 0x9ad   : > { %v1269_v5 = vpack.c.bf16 %v1268_v9, %v1268_v9 }
 0x9af   : > { %1722 = vmatmul.mubr.msk.bf16.vlgmr.msra.gmra.mrb[12].mxu1 %vm1300_vm7, %v1269_v5 }
 0xa82   : > { %v1338_v7 = vpop.f32.mrb[12].mxu1 }
 0xa83   : > { %v1339_v8 = vadd.f32 %v1629_v6, %v1338_v7  ;;  %v1723_v10 = vpop.f32.mrb[13].mxu1 }
 0xa84   : > { %v1341_v11 = vpop.f32.mrb[14].mxu1 }
 0xa85   : > { %v1344_v12 = vadd.f32 %v1339_v8, %v1172_v34  ;;  %v1724_v13 = vpop.f32.mrb[15].mxu1 }
 0xa87   : > { %1345 = vst.msk [vmem:[%s2495_s29] sm:$0xff] %vm776_vm1, %v1344_v12 }
 0xa88   : > { %1975 = shalt.err (!%p1972_p4)
}
 0xa89   : > { %s1976_s0 = scalar_lea.hbm %s2614_s22, 128  ;;  %s1980_s28 = scalar_lea.hbm %s2785_s10, 256 }
 0xa8a   : > { %p1977_p12 = scmp.ne.s32.totalorder %s2614_s22, %s1976_s0  ;;  %p1981_p1 = scmp.lt.u32.totalorder %s2614_s22, %s2785_s10 }
 0xa8b   : > { %p1982_p9 = scmp.lt.u32.totalorder %s1980_s28, %s1976_s0  ;;  %p1984_p11 = scmp.lt.u32.totalorder %s1976_s0, %s2614_s22 }
 0xa8c   : > { %p1978_p0 = pnand %p1977_p12, %p2786_p7 }
 0xa8d   : > { %p1983_p5 = por %p1982_p9, %p1981_p1 }
 0xa8e   : > { %p1979_p13 = pneg %p1978_p0 }
 0xa8f   : > { %p1985_p3 = por %p1984_p11, %p1983_p5 }
 0xa91   : > { %p1986_p10 = pnand %p1985_p3, %p1979_p13 }
 0xa93   : > { %1989 = shalt.err (!%p1986_p10)
}
 0xa94   : > { %1731 = dma.vmem_to_hbm [thread:$0]  (%p2786_p7), %s2616_s7, 128, %s2614_s22, %s1347_s12  }
 0xa95 PF: > { %s2787_s11 = sld [smem:[#allocation21_spill]]  ;;  %s2788_s27 = sld [smem:[#allocation15_spill]] }
 0xa96   : > { %s2789_s26 = sld [smem:[#allocation23_spill]] }
 0xa9b   : > { %p1748_p8 = scmp.ge.s32.totalorder %s2787_s11, 2  ;;  %s1372_s9 = sand.u32 1, %s2788_s27  }
 0xa9c   : > { %p2790_p2 = scmp.ne.s32.totalorder %s2789_s26, 0  ;;  %s1373_s6 = scalar_lea.sflag [#allocation4], %s1372_s9 }
 0xa9e   : > { %p1744_p6 = pnand %p1748_p8, %p2790_p2 }
 0xaa0   : > { %2047 = dma.done.wait (!%p1744_p6), %s1373_s6, 128  }
 0xaa1   : > { %2049 = vsyncadd (!%p1744_p6), %s1373_s6, 4294967168  ;;  %s33_s23 = sadd.s32 1, %s2787_s11   ;;  %s2791_s29 = sld [smem:[#allocation13_spill]] }
 0xaa2   : > { %p30_p4 = scmp.ge.s32.totalorder %s33_s23, 6   ;;  %s2792_s30 = sld [smem:[#allocation14_spill]] }
 0xaa3   : > { %s2793_s15 = sld [smem:[#allocation26_spill]]  ;;  %s2794_s16 = sld [smem:[#allocation16_spill]] }
 0xaa4   : > { %s2795_s17 = sld [smem:[#allocation17_spill]]  ;;  %s2796_s18 = sld [smem:[#allocation27_spill]] }
 0xaa5   : > { %s2797_s19 = sld [smem:[#allocation19_spill]]  ;;  %s2798_s20 = sld [smem:[#allocation20_spill]] }
 0xaa6   : > { %s2799_s21 = sld [smem:[#allocation24_spill]]  ;;  %s2800_s22 = sld [smem:[#allocation25_spill]] }
 0xaa7   :  { %32 = sbr.rel (!%p30_p4) target bundleno = 24 (0x18), region = 182 }
 0xaae   :  { %1378 = vsyncpa [#allocation3], 1 }
 0xaaf   :  { %1380 = vsyncpa [#allocation3 + $0x1], 1 }
 0xab0   :  { %1381 = vsyncpa [#allocation6], 1 }
 0xab1   :  { %1383 = vsyncpa [#allocation6 + $0x1], 1 }
 0xab2   :  { %1384 = vsyncpa [#allocation4], 1 }
 0xab3   :  { %1386 = vsyncpa [#allocation4 + $0x1], 1 }

</bundles_post_ra>
